<compile_context>
chip_gen: v6e
topology: v6e:2x2x1
jax: 0.10.0
libtpu: 0.0.40
codegen_flags: <defaults>
</compile_context>

<pallas_src>
import functools

import jax
import jax.numpy as jnp
from jax.experimental import pallas as pl
from jax.experimental.pallas import tpu as pltpu


def _round_up(x, m):
    return ((x + m - 1) // m) * m


def _ae_kernel(x_ref, w1_ref, b1_ref, w2_ref, b2_ref, o_ref, *, approx_sigmoid):
    # encoder: Linear(784 -> 64, zero-padded to 128 lanes) + ReLU
    h = jnp.dot(x_ref[...], w1_ref[...], preferred_element_type=jnp.float32)
    h = jnp.maximum(h + b1_ref[...], 0.0)                    # (TB,128) + (1,128)
    # decoder: Linear(128 -> 784) + Sigmoid (padded rows of w2 are exactly zero)
    y = jnp.dot(h.astype(w2_ref.dtype), w2_ref[...],
                preferred_element_type=jnp.float32)
    z = y + b2_ref[...]
    if approx_sigmoid:
        # divide on the EUP slot (free next to the store-heavy epilogue)
        out = pl.reciprocal(1.0 + jnp.exp(-z), approx=True)
    else:
        out = jax.nn.sigmoid(z)
    o_ref[...] = out.astype(o_ref.dtype)


def prepare_params(w1, b1, w2, b2, compute_dtype=jnp.float32):
    """One-time parameter prep (run at init, NOT per forward call).

    Pads the hidden dim 64 -> 128 with exact zeros (bit-identical: ReLU of the
    zero lanes is 0 and the extra w2 rows are 0), reshapes biases to (1, N),
    and casts the weights to the compute dtype. Biases stay f32 (they are
    added to f32 accumulators)."""
    f_hid = w1.shape[1]
    h_pad = _round_up(f_hid, 128)
    w1p = jnp.pad(w1, ((0, 0), (0, h_pad - f_hid))).astype(compute_dtype)
    b1p = jnp.pad(jnp.reshape(b1, (1, -1)),
                  ((0, 0), (0, h_pad - f_hid))).astype(jnp.float32)
    w2p = jnp.pad(w2, ((0, h_pad - f_hid), (0, 0))).astype(compute_dtype)
    b2p = jnp.reshape(b2, (1, -1)).astype(jnp.float32)
    return w1p, b1p, w2p, b2p


def autoencoder_forward(x, params, *, block_b=512, out_dtype=None,
                        vmem_limit_bytes=None):
    """x: (B, 784), f32 or bf16 (streamed at its stored dtype, no wrapper cast).
    params: output of prepare_params(). out_dtype defaults to x.dtype.

    block_b: batch tile. 512 is safe under every generation's default scoped
    VMEM in f32; on v6e/v7x use 1024 (f32 needs vmem_limit_bytes≈40e6 beyond
    that). The kernel is HBM-bandwidth-bound, so bigger tiles just amortize
    the ~0.35 us per-grid-step overhead."""
    w1, b1, w2, b2 = params
    B, f_in = x.shape
    h_pad = w1.shape[1]
    f_out = w2.shape[1]
    if out_dtype is None:
        out_dtype = x.dtype

    # Guarantee >=2 grid steps when B allows it (v7x megacore sharding of the
    # "parallel" batch axis; harmless on single-TC v5e/v6e). Tile rows stay a
    # multiple of 8 (sublane); the last block may be partial -> Pallas masks
    # the out-of-range output rows, and garbage input rows only ever feed
    # garbage (never-written) output rows since rows are independent.
    tb = max(8, min(block_b, _round_up(max(-(-B // 2), 1), 8)))
    grid = (pl.cdiv(B, tb),)

    # Exact sigmoid on the f32 path (keeps 1e-5 agreement with the reference);
    # EUP approx-reciprocal sigmoid on the bf16 path (well inside 2e-2).
    approx_sigmoid = (x.dtype == jnp.bfloat16) or (out_dtype == jnp.bfloat16)
    kernel = functools.partial(_ae_kernel, approx_sigmoid=approx_sigmoid)

    compiler_params = pltpu.CompilerParams(
        dimension_semantics=("parallel",),
        vmem_limit_bytes=vmem_limit_bytes,
    )

    return pl.pallas_call(
        kernel,
        out_shape=jax.ShapeDtypeStruct((B, f_out), out_dtype),
        grid_spec=pltpu.PrefetchScalarGridSpec(
            num_scalar_prefetch=0,
            grid=grid,
            in_specs=[
                pl.BlockSpec((tb, f_in), lambda i: (i, 0)),      # x: streamed
                pl.BlockSpec((f_in, h_pad), lambda i: (0, 0)),   # w1: resident
                pl.BlockSpec((1, h_pad), lambda i: (0, 0)),      # b1: resident
                pl.BlockSpec((h_pad, f_out), lambda i: (0, 0)),  # w2: resident
                pl.BlockSpec((1, f_out), lambda i: (0, 0)),      # b2: resident
            ],
            out_specs=pl.BlockSpec((tb, f_out), lambda i: (i, 0)),
        ),
        compiler_params=compiler_params,
    )(x, w1, b1, w2, b2)


def init_params(key):
    """Deterministic params mirroring torch.nn.Linear default init
    (uniform(-1/sqrt(fan_in), 1/sqrt(fan_in))), stored as (in, out)."""
    k1, k2, k3, k4 = jax.random.split(key, 4)
    bound1 = 1.0 / jnp.sqrt(784.0)
    bound2 = 1.0 / jnp.sqrt(64.0)
    w1 = jax.random.uniform(k1, (784, 64), jnp.float32, -bound1, bound1)
    b1 = jax.random.uniform(k2, (1, 64), jnp.float32, -bound1, bound1)
    w2 = jax.random.uniform(k3, (64, 784), jnp.float32, -bound2, bound2)
    b2 = jax.random.uniform(k4, (1, 784), jnp.float32, -bound2, bound2)
    return w1, b1, w2, b2


def _reference(x, w1, b1, w2, b2):
    h = jnp.maximum(x @ w1 + b1, 0.0)
    return jax.nn.sigmoid(h @ w2 + b2)


if __name__ == "__main__":
    key = jax.random.PRNGKey(0)
    kx, kp = jax.random.split(key)
    w1, b1, w2, b2 = init_params(kp)

    # --- f32 path, small batch (single grid step) --------------------------
    params_f32 = prepare_params(w1, b1, w2, b2, compute_dtype=jnp.float32)
    B = 8
    x = jax.random.uniform(kx, (B, 784), jnp.float32)
    out = jax.block_until_ready(autoencoder_forward(x, params_f32))
    ref = _reference(x, w1, b1, w2, b2)
    assert out.shape == (B, 784) and out.dtype == jnp.float32
    assert jnp.allclose(out, ref, atol=1e-5), "f32 mismatch vs reference (B=8)"

    # --- f32 path, multi-tile with a ragged tail (partial last block) ------
    B2 = 40
    x2 = jax.random.uniform(kx, (B2, 784), jnp.float32)
    out2 = jax.block_until_ready(
        autoencoder_forward(x2, params_f32, block_b=16))
    ref2 = _reference(x2, w1, b1, w2, b2)
    assert out2.shape == (B2, 784)
    assert jnp.allclose(out2, ref2, atol=1e-5), "f32 mismatch vs reference (B=40)"
    assert jnp.all(jnp.isfinite(out2)), "non-finite values leaked from partial block"

    # --- bf16 end-to-end path: x stored bf16 upstream, bf16 output ---------
    params_bf16 = prepare_params(w1, b1, w2, b2, compute_dtype=jnp.bfloat16)
    x_bf16 = x.astype(jnp.bfloat16)          # "upstream" storage, not a per-call cast
    out_bf16 = jax.block_until_ready(
        autoencoder_forward(x_bf16, params_bf16, out_dtype=jnp.bfloat16))
    assert out_bf16.dtype == jnp.bfloat16
    assert jnp.allclose(out_bf16.astype(jnp.float32), ref, atol=2e-2), \
        "bf16 path diverged"

    print("KERNEL_OK")
</pallas_src>

<mosaic_0001>
module attributes {stable_mosaic.version = 11 : i64} {
  func.func @_ae_kernel(%arg0: i32, %arg1: memref<8x784xf32, #tpu.memory_space<vmem>>, %arg2: memref<784x128xf32, #tpu.memory_space<vmem>>, %arg3: memref<1x128xf32, #tpu.memory_space<vmem>>, %arg4: memref<128x784xf32, #tpu.memory_space<vmem>>, %arg5: memref<1x784xf32, #tpu.memory_space<vmem>>, %arg6: memref<8x784xf32, #tpu.memory_space<vmem>>) attributes {dimension_semantics = [#tpu.dimension_semantics<parallel>], iteration_bounds = array<i64: 1>, scalar_prefetch = 0 : i64, scratch_operands = 0 : i64, tpu.core_type = #tpu.core_type<tc>, window_params = [{transform_indices = @transform_0, window_bounds = array<i64: 8, 784>}, {pipeline_mode = #tpu.pipeline_mode<synchronous>, transform_indices = @transform_1, window_bounds = array<i64: 784, 128>}, {pipeline_mode = #tpu.pipeline_mode<synchronous>, transform_indices = @transform_2, window_bounds = array<i64: 1, 128>}, {pipeline_mode = #tpu.pipeline_mode<synchronous>, transform_indices = @transform_3, window_bounds = array<i64: 128, 784>}, {pipeline_mode = #tpu.pipeline_mode<synchronous>, transform_indices = @transform_4, window_bounds = array<i64: 1, 784>}, {transform_indices = @transform_5, window_bounds = array<i64: 8, 784>}]} {
    %c0 = arith.constant 0 : index
    %c0_0 = arith.constant 0 : index
    %0 = vector.load %arg1[%c0, %c0_0] : memref<8x784xf32, #tpu.memory_space<vmem>>, vector<8x784xf32>
    %c0_1 = arith.constant 0 : index
    %c0_2 = arith.constant 0 : index
    %1 = vector.load %arg2[%c0_1, %c0_2] : memref<784x128xf32, #tpu.memory_space<vmem>>, vector<784x128xf32>
    %cst = arith.constant dense<0.000000e+00> : vector<8x128xf32>
    %2 = tpu.matmul %0, %1, %cst {dimension_numbers = #tpu.dot_dimension_numbers<[1], [0], [0], [1], [0, 0, 1, 1], [], []>} : vector<8x784xf32>, vector<784x128xf32>, vector<8x128xf32> -> vector<8x128xf32>
    %c0_3 = arith.constant 0 : index
    %c0_4 = arith.constant 0 : index
    %3 = vector.load %arg3[%c0_3, %c0_4] : memref<1x128xf32, #tpu.memory_space<vmem>>, vector<1x128xf32>
    %4 = vector.broadcast %3 : vector<1x128xf32> to vector<8x128xf32>
    %5 = arith.addf %2, %4 : vector<8x128xf32>
    %cst_5 = arith.constant 0.000000e+00 : f32
    %6 = vector.broadcast %cst_5 : f32 to vector<8x128xf32>
    %7 = arith.maximumf %5, %6 : vector<8x128xf32>
    %c0_6 = arith.constant 0 : index
    %c0_7 = arith.constant 0 : index
    %8 = vector.load %arg4[%c0_6, %c0_7] : memref<128x784xf32, #tpu.memory_space<vmem>>, vector<128x784xf32>
    %cst_8 = arith.constant dense<0.000000e+00> : vector<8x784xf32>
    %9 = tpu.matmul %7, %8, %cst_8 {dimension_numbers = #tpu.dot_dimension_numbers<[1], [0], [0], [1], [0, 0, 1, 1], [], []>} : vector<8x128xf32>, vector<128x784xf32>, vector<8x784xf32> -> vector<8x784xf32>
    %c0_9 = arith.constant 0 : index
    %c0_10 = arith.constant 0 : index
    %10 = vector.load %arg5[%c0_9, %c0_10] : memref<1x784xf32, #tpu.memory_space<vmem>>, vector<1x784xf32>
    %11 = vector.broadcast %10 : vector<1x784xf32> to vector<8x784xf32>
    %12 = arith.addf %9, %11 : vector<8x784xf32>
    %13 = arith.negf %12 : vector<8x784xf32>
    %14 = math.exp %13 : vector<8x784xf32>
    %cst_11 = arith.constant 1.000000e+00 : f32
    %15 = vector.broadcast %cst_11 : f32 to vector<8x784xf32>
    %16 = arith.addf %15, %14 : vector<8x784xf32>
    %17 = arith.divf %15, %16 : vector<8x784xf32>
    %c0_12 = arith.constant 0 : index
    %c0_13 = arith.constant 0 : index
    %18 = vector.load %arg6[%c0_12, %c0_13] : memref<8x784xf32, #tpu.memory_space<vmem>>, vector<8x784xf32>
    tpu.vector_store %arg6[%c0_12, %c0_13], %17 {strides = array<i32>} : memref<8x784xf32, #tpu.memory_space<vmem>>, vector<8x784xf32>,
    return
  }
  func.func @transform_0(%arg0: i32) -> (i32, i32) {
    %c0_i32 = arith.constant 0 : i32
    %c0_i32_0 = arith.constant 0 : i32
    return %arg0, %c0_i32 : i32, i32
  }
  func.func @transform_1(%arg0: i32) -> (i32, i32) {
    %c0_i32 = arith.constant 0 : i32
    %c0_i32_0 = arith.constant 0 : i32
    %c0_i32_1 = arith.constant 0 : i32
    return %c0_i32, %c0_i32_0 : i32, i32
  }
  func.func @transform_2(%arg0: i32) -> (i32, i32) {
    %c0_i32 = arith.constant 0 : i32
    %c0_i32_0 = arith.constant 0 : i32
    %c0_i32_1 = arith.constant 0 : i32
    return %c0_i32, %c0_i32_0 : i32, i32
  }
  func.func @transform_3(%arg0: i32) -> (i32, i32) {
    %c0_i32 = arith.constant 0 : i32
    %c0_i32_0 = arith.constant 0 : i32
    %c0_i32_1 = arith.constant 0 : i32
    return %c0_i32, %c0_i32_0 : i32, i32
  }
  func.func @transform_4(%arg0: i32) -> (i32, i32) {
    %c0_i32 = arith.constant 0 : i32
    %c0_i32_0 = arith.constant 0 : i32
    %c0_i32_1 = arith.constant 0 : i32
    return %c0_i32, %c0_i32_0 : i32, i32
  }
  func.func @transform_5(%arg0: i32) -> (i32, i32) {
    %c0_i32 = arith.constant 0 : i32
    %c0_i32_0 = arith.constant 0 : i32
    return %arg0, %c0_i32 : i32, i32
  }
}

</mosaic_0001>

<bundles_post_ra>
// kernel: tpu_custom_call.1
= control target key start
LH: loop header
LB: loop body
LE: loop exit
PB: predicated region body
PF: predicated region fallthrough
CT: control target
= control target key end

     0   :  { %s1868_s0 = inlined_call_operand.vmem [shape: f32[8,784], index: 0, kind: input, shape index: {}]   ;;  %s1869_s1 = inlined_call_operand.vmem [shape: f32[784,128], index: 1, kind: input, shape index: {}]   ;;  %s1870_s2 = inlined_call_operand.vmem [shape: f32[1,128], index: 2, kind: input, shape index: {}]   ;;  %s1871_s3 = inlined_call_operand.vmem [shape: f32[128,784], index: 3, kind: input, shape index: {}]   ;;  %s1872_s4 = inlined_call_operand.vmem [shape: f32[1,784], index: 4, kind: input, shape index: {}]   ;;  %s1873_s5 = inlined_call_operand.hbm [shape: f32[8,784], index: 5, kind: output, shape index: {}]  }
   0x1   :  { %v59_v0 = vld [vmem:[%s1869_s1 + $0xf8] sm:$0xff]  ;;  %v58_v2 = vld [vmem:[%s1869_s1 + $0xf0] sm:$0xff]  ;;  %v57_v6 = vld [vmem:[%s1869_s1 + $0xe8] sm:$0xff] }
   0x2   :  { %v43_v1 = vld [vmem:[%s1869_s1 + $0x78] sm:$0xff]  ;;  %922 = vmatprep.subr.mxu0 %v59_v0  ;;  %v42_v4 = vld [vmem:[%s1869_s1 + $0x70] sm:$0xff]  ;;  %v41_v8 = vld [vmem:[%s1869_s1 + $0x68] sm:$0xff] }
   0x3   :  { %v91_v3 = vld [vmem:[%s1869_s1 + $0x1f8] sm:$0xff]  ;;  %923 = vmatpush3.msra.mxu0 %v43_v1  ;;  %v90_v7 = vld [vmem:[%s1869_s1 + $0x1f0] sm:$0xff]  ;;  %v89_v10 = vld [vmem:[%s1869_s1 + $0x1e8] sm:$0xff] }
   0x4   :  { %v75_v5 = vld [vmem:[%s1869_s1 + $0x178] sm:$0xff]  ;;  %957 = vmatprep.subr.mxu1 %v91_v3  ;;  %924 = vmatprep.subr.mxu0 %v58_v2  ;;  %v74_v9 = vld [vmem:[%s1869_s1 + $0x170] sm:$0xff]  ;;  %v56_v11 = vld [vmem:[%s1869_s1 + $0xe0] sm:$0xff] }
   0x5   :  { %958 = vmatpush3.msra.mxu1 %v75_v5  ;;  %925 = vmatpush3.msra.mxu0 %v42_v4  ;;  %v73_v12 = vld [vmem:[%s1869_s1 + $0x168] sm:$0xff]  ;;  %v40_v13 = vld [vmem:[%s1869_s1 + $0x60] sm:$0xff]  ;;  %v55_v15 = vld [vmem:[%s1869_s1 + $0xd8] sm:$0xff] }
   0x6   :  { %959 = vmatprep.subr.mxu1 %v90_v7  ;;  %926 = vmatprep.subr.mxu0 %v57_v6  ;;  %v88_v14 = vld [vmem:[%s1869_s1 + $0x1e0] sm:$0xff]  ;;  %v39_v17 = vld [vmem:[%s1869_s1 + $0x58] sm:$0xff]  ;;  %v54_v19 = vld [vmem:[%s1869_s1 + $0xd0] sm:$0xff] }
   0x7   :  { %960 = vmatpush3.msra.mxu1 %v74_v9  ;;  %927 = vmatpush3.msra.mxu0 %v41_v8  ;;  %v72_v16 = vld [vmem:[%s1869_s1 + $0x160] sm:$0xff]  ;;  %v87_v18 = vld [vmem:[%s1869_s1 + $0x1d8] sm:$0xff]  ;;  %v38_v21 = vld [vmem:[%s1869_s1 + $0x50] sm:$0xff] }
   0x8   :  { %961 = vmatprep.subr.mxu1 %v89_v10  ;;  %928 = vmatprep.subr.mxu0 %v56_v11  ;;  %v71_v20 = vld [vmem:[%s1869_s1 + $0x158] sm:$0xff]  ;;  %v86_v22 = vld [vmem:[%s1869_s1 + $0x1d0] sm:$0xff]  ;;  %v53_v23 = vld [vmem:[%s1869_s1 + $0xc8] sm:$0xff] }
   0x9   :  { %962 = vmatpush3.msra.mxu1 %v73_v12  ;;  %929 = vmatpush3.msra.mxu0 %v40_v13  ;;  %v70_v24 = vld [vmem:[%s1869_s1 + $0x150] sm:$0xff]  ;;  %v37_v25 = vld [vmem:[%s1869_s1 + $0x48] sm:$0xff]  ;;  %v52_v27 = vld [vmem:[%s1869_s1 + $0xc0] sm:$0xff] }
   0xa   :  { %963 = vmatprep.subr.mxu1 %v88_v14  ;;  %930 = vmatprep.subr.mxu0 %v55_v15  ;;  %v85_v26 = vld [vmem:[%s1869_s1 + $0x1c8] sm:$0xff]  ;;  %v36_v29 = vld [vmem:[%s1869_s1 + $0x40] sm:$0xff]  ;;  %v51_v31 = vld [vmem:[%s1869_s1 + $0xb8] sm:$0xff] }
   0xb   :  { %964 = vmatpush3.msra.mxu1 %v72_v16  ;;  %931 = vmatpush3.msra.mxu0 %v39_v17  ;;  %v69_v28 = vld [vmem:[%s1869_s1 + $0x148] sm:$0xff]  ;;  %v84_v30 = vld [vmem:[%s1869_s1 + $0x1c0] sm:$0xff]  ;;  %v35_v33 = vld [vmem:[%s1869_s1 + $0x38] sm:$0xff] }
   0xc   :  { %965 = vmatprep.subr.mxu1 %v87_v18  ;;  %932 = vmatprep.subr.mxu0 %v54_v19  ;;  %v68_v32 = vld [vmem:[%s1869_s1 + $0x140] sm:$0xff]  ;;  %v83_v34 = vld [vmem:[%s1869_s1 + $0x1b8] sm:$0xff]  ;;  %v50_v35 = vld [vmem:[%s1869_s1 + $0xb0] sm:$0xff] }
   0xd   :  { %966 = vmatpush3.msra.mxu1 %v71_v20  ;;  %933 = vmatpush3.msra.mxu0 %v38_v21  ;;  %v67_v36 = vld [vmem:[%s1869_s1 + $0x138] sm:$0xff]  ;;  %v34_v37 = vld [vmem:[%s1869_s1 + $0x30] sm:$0xff]  ;;  %v49_v39 = vld [vmem:[%s1869_s1 + $0xa8] sm:$0xff] }
   0xe   :  { %967 = vmatprep.subr.mxu1 %v86_v22  ;;  %934 = vmatprep.subr.mxu0 %v53_v23  ;;  %v82_v38 = vld [vmem:[%s1869_s1 + $0x1b0] sm:$0xff]  ;;  %v33_v41 = vld [vmem:[%s1869_s1 + $0x28] sm:$0xff]  ;;  %v48_v43 = vld [vmem:[%s1869_s1 + $0xa0] sm:$0xff] }
   0xf   :  { %968 = vmatpush3.msra.mxu1 %v70_v24  ;;  %935 = vmatpush3.msra.mxu0 %v37_v25  ;;  %v66_v40 = vld [vmem:[%s1869_s1 + $0x130] sm:$0xff]  ;;  %v81_v42 = vld [vmem:[%s1869_s1 + $0x1a8] sm:$0xff]  ;;  %v32_v45 = vld [vmem:[%s1869_s1 + $0x20] sm:$0xff] }
  0x10   :  { %969 = vmatprep.subr.mxu1 %v85_v26  ;;  %936 = vmatprep.subr.mxu0 %v52_v27  ;;  %v65_v44 = vld [vmem:[%s1869_s1 + $0x128] sm:$0xff]  ;;  %v80_v46 = vld [vmem:[%s1869_s1 + $0x1a0] sm:$0xff]  ;;  %v47_v47 = vld [vmem:[%s1869_s1 + $0x98] sm:$0xff] }
  0x11   :  { %970 = vmatpush3.msra.mxu1 %v69_v28  ;;  %937 = vmatpush3.msra.mxu0 %v36_v29  ;;  %v64_v48 = vld [vmem:[%s1869_s1 + $0x120] sm:$0xff]  ;;  %v31_v49 = vld [vmem:[%s1869_s1 + $0x18] sm:$0xff]  ;;  %v46_v51 = vld [vmem:[%s1869_s1 + $0x90] sm:$0xff] }
  0x12   :  { %971 = vmatprep.subr.mxu1 %v84_v30  ;;  %938 = vmatprep.subr.mxu0 %v51_v31  ;;  %v79_v50 = vld [vmem:[%s1869_s1 + $0x198] sm:$0xff]  ;;  %v30_v53 = vld [vmem:[%s1869_s1 + $0x10] sm:$0xff]  ;;  %v45_v55 = vld [vmem:[%s1869_s1 + $0x88] sm:$0xff] }
  0x13   :  { %972 = vmatpush3.msra.mxu1 %v68_v32  ;;  %939 = vmatpush3.msra.mxu0 %v35_v33  ;;  %v63_v52 = vld [vmem:[%s1869_s1 + $0x118] sm:$0xff]  ;;  %v78_v54 = vld [vmem:[%s1869_s1 + $0x190] sm:$0xff]  ;;  %v29_v57 = vld [vmem:[%s1869_s1 + $0x8] sm:$0xff] }
  0x14   :  { %973 = vmatprep.subr.mxu1 %v83_v34  ;;  %940 = vmatprep.subr.mxu0 %v50_v35  ;;  %v62_v56 = vld [vmem:[%s1869_s1 + $0x110] sm:$0xff]  ;;  %v77_v58 = vld [vmem:[%s1869_s1 + $0x188] sm:$0xff]  ;;  %v44_v59 = vld [vmem:[%s1869_s1 + $0x80] sm:$0xff] }
  0x15   :  { %974 = vmatpush3.msra.mxu1 %v67_v36  ;;  %941 = vmatpush3.msra.mxu0 %v34_v37  ;;  %v22_v60 = vld [vmem:[%s1868_s0 + $0x8] sm:$0xff]  ;;  %v28_v61 = vld [vmem:[%s1869_s1] sm:$0xff]  ;;  %v123_v1 = vld [vmem:[%s1869_s1 + $0x2f8] sm:$0xff] }
  0x16   :  { %975 = vmatprep.subr.mxu1 %v82_v38  ;;  %942 = vmatprep.subr.mxu0 %v49_v39  ;;  %v61_v62 = vld [vmem:[%s1869_s1 + $0x108] sm:$0xff]  ;;  %v21_v63 = vld [vmem:[%s1868_s0] sm:$0xff]  ;;  %v24_v3 = vld [vmem:[%s1868_s0 + $0x18] sm:$0xff] }
  0x17   :  { %976 = vmatpush3.msra.mxu1 %v66_v40  ;;  %943 = vmatpush3.msra.mxu0 %v33_v41  ;;  %v76_v0 = vld [vmem:[%s1869_s1 + $0x180] sm:$0xff]  ;;  %v107_v4 = vld [vmem:[%s1869_s1 + $0x278] sm:$0xff]  ;;  %v23_v5 = vld [vmem:[%s1868_s0 + $0x10] sm:$0xff] }
  0x18   :  { %977 = vmatprep.subr.mxu1 %v81_v42  ;;  %944 = vmatprep.subr.mxu0 %v48_v43  ;;  %v60_v2 = vld [vmem:[%s1869_s1 + $0x100] sm:$0xff]  ;;  %v122_v6 = vld [vmem:[%s1869_s1 + $0x2f0] sm:$0xff]  ;;  %v26_v8 = vld [vmem:[%s1868_s0 + $0x28] sm:$0xff] }
  0x19   :  { %978 = vmatpush3.msra.mxu1 %v65_v44  ;;  %945 = vmatpush3.msra.mxu0 %v32_v45  ;;  %v106_v7 = vld [vmem:[%s1869_s1 + $0x270] sm:$0xff]  ;;  %v121_v9 = vld [vmem:[%s1869_s1 + $0x2e8] sm:$0xff] }
  0x1a   :  { %979 = vmatprep.subr.mxu1 %v80_v46  ;;  %946 = vmatprep.subr.mxu0 %v47_v47 }
  0x1b   :  { %980 = vmatpush3.msra.mxu1 %v64_v48  ;;  %947 = vmatpush3.msra.mxu0 %v31_v49 }
  0x1c   :  { %981 = vmatprep.subr.mxu1 %v79_v50  ;;  %948 = vmatprep.subr.mxu0 %v46_v51 }
  0x1d   :  { %982 = vmatpush3.msra.mxu1 %v63_v52  ;;  %949 = vmatpush3.msra.mxu0 %v30_v53 }
  0x1e   :  { %983 = vmatprep.subr.mxu1 %v78_v54  ;;  %950 = vmatprep.subr.mxu0 %v45_v55 }
  0x1f   :  { %984 = vmatpush3.msra.mxu1 %v62_v56  ;;  %951 = vmatpush3.msra.mxu0 %v29_v57 }
  0x20   :  { %985 = vmatprep.subr.mxu1 %v77_v58  ;;  %952 = vmatprep.subr.mxu0 %v44_v59 }
  0x21   :  { %201 = vmatprep.mubr.f32.mxu0 %v22_v60  ;;  %953 = vmatpush3.msra.mxu0 %v28_v61 }
  0x22   :  { %986 = vmatpush3.msra.mxu1 %v61_v62  ;;  %202 = vmatmul.mubr.f32.vlgmr.msra.gmra.mxu0 %v21_v63 }
  0x23   :  { %987 = vmatprep.subr.mxu1 %v76_v0  ;;  %992 = vmatprep.subr.mxu0 %v123_v1 }
  0x24   :  { %988 = vmatpush3.msra.mxu1 %v60_v2  ;;  %271 = vmatprep.mubr.f32.mxu1 %v24_v3 }
  0x25   :  { %993 = vmatpush3.msra.mxu0 %v107_v4 }
  0x26   :  { %10 = vsyncpa [#allocation3], 0  ;;  %272 = vmatmul.mubr.f32.vlgmr.msra.gmra.mxu1 %v23_v5  ;;  %994 = vmatprep.subr.mxu0 %v122_v6  ;;  %v105_v10 = vld [vmem:[%s1869_s1 + $0x268] sm:$0xff]  ;;  %v120_v12 = vld [vmem:[%s1869_s1 + $0x2e0] sm:$0xff]  ;;  %v1142_v14 = vmov 0.0   ;;  %vm133_vm0 = vcmask 130048  }
  0x27   :  { %v125_v11 = vld [vmem:[%s1869_s1 + $0x308] sm:$0xff]  ;;  %995 = vmatpush3.msra.mxu0 %v106_v7  ;;  %341 = vmatprep.mubr.f32.mxu0 %v26_v8  ;;  %v104_v13 = vld [vmem:[%s1869_s1 + $0x260] sm:$0xff]  ;;  %v119_v16 = vld [vmem:[%s1869_s1 + $0x2d8] sm:$0xff]  ;;  %vm1143_vm1 = vmmov 0  }
  0x28   :  { %996 = vmatprep.subr.mxu0 %v121_v9  ;;  %1047 = vmatprep.subr.mxu1 %v1142_v14  ;;  %v124_v15 = vld [vmem:[%s1869_s1 + $0x300] sm:$0xff]  ;;  %v103_v17 = vld [vmem:[%s1869_s1 + $0x258] sm:$0xff]  ;;  %v27_v18 = vld [vmem:[%s1868_s0 + $0x30] sm:$0xff] }
  0x29   :  { %997 = vmatpush3.msra.mxu0 %v105_v10  ;;  %1048 = vmatpush3.msra.mxu1 %v125_v11  ;;  %v118_v19 = vld [vmem:[%s1869_s1 + $0x2d0] sm:$0xff]  ;;  %v117_v21 = vld [vmem:[%s1869_s1 + $0x2c8] sm:$0xff]  ;;  %v116_v23 = vld [vmem:[%s1869_s1 + $0x2c0] sm:$0xff] }
  0x2a   :  { %998 = vmatprep.subr.mxu0 %v120_v12  ;;  %1049 = vmatprep.subr.mxu1 %v1142_v14  ;;  %v102_v20 = vld [vmem:[%s1869_s1 + $0x250] sm:$0xff]  ;;  %v101_v22 = vld [vmem:[%s1869_s1 + $0x248] sm:$0xff]  ;;  %v100_v24 = vld [vmem:[%s1869_s1 + $0x240] sm:$0xff] }
  0x2b   :  { %999 = vmatpush3.msra.mxu0 %v104_v13  ;;  %1050 = vmatpush3.msra.mxu1 %v124_v15  ;;  %v115_v25 = vld [vmem:[%s1869_s1 + $0x2b8] sm:$0xff]  ;;  %v114_v27 = vld [vmem:[%s1869_s1 + $0x2b0] sm:$0xff]  ;;  %v113_v29 = vld [vmem:[%s1869_s1 + $0x2a8] sm:$0xff] }
  0x2c   :  { %1000 = vmatprep.subr.mxu0 %v119_v16  ;;  %1051 = vmatprep.mubr.msk.f32.mxu1 %vm1143_vm1, %v1142_v14  ;;  %v99_v26 = vld [vmem:[%s1869_s1 + $0x238] sm:$0xff]  ;;  %v98_v28 = vld [vmem:[%s1869_s1 + $0x230] sm:$0xff]  ;;  %v97_v30 = vld [vmem:[%s1869_s1 + $0x228] sm:$0xff] }
  0x2d   :  { %1001 = vmatpush3.msra.mxu0 %v103_v17  ;;  %1052 = vmatmul.mubr.msk.f32.vlgmr.msra.gmra.mxu1 %vm133_vm0, %v27_v18  ;;  %v112_v31 = vld [vmem:[%s1869_s1 + $0x2a0] sm:$0xff]  ;;  %v111_v33 = vld [vmem:[%s1869_s1 + $0x298] sm:$0xff]  ;;  %v110_v35 = vld [vmem:[%s1869_s1 + $0x290] sm:$0xff] }
  0x2e   :  { %1002 = vmatprep.subr.mxu0 %v118_v19  ;;  %631 = vmatprep.mubr.f32.mxu1 %v1142_v14  ;;  %v96_v32 = vld [vmem:[%s1869_s1 + $0x220] sm:$0xff]  ;;  %v95_v34 = vld [vmem:[%s1869_s1 + $0x218] sm:$0xff]  ;;  %v94_v36 = vld [vmem:[%s1869_s1 + $0x210] sm:$0xff] }
  0x2f   :  { %1003 = vmatpush3.msra.mxu0 %v102_v20  ;;  %v109_v37 = vld [vmem:[%s1869_s1 + $0x288] sm:$0xff]  ;;  %v108_v39 = vld [vmem:[%s1869_s1 + $0x280] sm:$0xff]  ;;  %v524_v42 = vld [vmem:[%s1871_s3 + $0x350] sm:$0xff] }
  0x30   :  { %1004 = vmatprep.subr.mxu0 %v117_v21  ;;  %v93_v38 = vld [vmem:[%s1869_s1 + $0x208] sm:$0xff]  ;;  %v92_v40 = vld [vmem:[%s1869_s1 + $0x200] sm:$0xff]  ;;  %567 = vmatprep.subr.mxu1 %v524_v42  ;;  %v525_v45 = vld [vmem:[%s1871_s3 + $0x358] sm:$0xff] }
  0x31   :  { %1005 = vmatpush3.msra.mxu0 %v101_v22  ;;  %v25_v41 = vld [vmem:[%s1868_s0 + $0x20] sm:$0xff]  ;;  %v523_v44 = vld [vmem:[%s1871_s3 + $0x348] sm:$0xff]  ;;  %v517_v46 = vld [vmem:[%s1871_s3 + $0x318] sm:$0xff] }
  0x32   :  { %1006 = vmatprep.subr.mxu0 %v116_v23  ;;  %v526_v43 = vld [vmem:[%s1871_s3 + $0x360] sm:$0xff]  ;;  %v519_v47 = vld [vmem:[%s1871_s3 + $0x328] sm:$0xff]  ;;  %568 = vmatpush1.msra.mxu1 %v523_v44  ;;  %v516_v48 = vld [vmem:[%s1871_s3 + $0x310] sm:$0xff] }
  0x33   :  { %1007 = vmatpush3.msra.mxu0 %v100_v24  ;;  %v518_v49 = vld [vmem:[%s1871_s3 + $0x320] sm:$0xff]  ;;  %569 = vmatprep.subr.mxu1 %v517_v46  ;;  %v512_v51 = vld [vmem:[%s1871_s3 + $0x2f0] sm:$0xff]  ;;  %v509_v52 = vld [vmem:[%s1871_s3 + $0x2d8] sm:$0xff] }
  0x34   :  { %1008 = vmatprep.subr.mxu0 %v115_v25  ;;  %v510_v50 = vld [vmem:[%s1871_s3 + $0x2e0] sm:$0xff]  ;;  %v511_v53 = vld [vmem:[%s1871_s3 + $0x2e8] sm:$0xff]  ;;  %570 = vmatpush1.msra.mxu1 %v516_v48  ;;  %v505_v55 = vld [vmem:[%s1871_s3 + $0x2b8] sm:$0xff] }
  0x35   :  { %1009 = vmatpush3.msra.mxu0 %v99_v26  ;;  %v503_v54 = vld [vmem:[%s1871_s3 + $0x2a8] sm:$0xff]  ;;  %571 = vmatprep.subr.mxu1 %v510_v50  ;;  %v502_v56 = vld [vmem:[%s1871_s3 + $0x2a0] sm:$0xff]  ;;  %v504_v57 = vld [vmem:[%s1871_s3 + $0x2b0] sm:$0xff] }
  0x36   :  { %1010 = vmatprep.subr.mxu0 %v114_v27  ;;  %572 = vmatpush1.msra.mxu1 %v509_v52  ;;  %v496_v58 = vld [vmem:[%s1871_s3 + $0x270] sm:$0xff]  ;;  %v498_v59 = vld [vmem:[%s1871_s3 + $0x280] sm:$0xff]  ;;  %v495_v60 = vld [vmem:[%s1871_s3 + $0x268] sm:$0xff] }
  0x37   :  { %1011 = vmatpush3.msra.mxu0 %v98_v28  ;;  %573 = vmatprep.subr.mxu1 %v503_v54  ;;  %v497_v61 = vld [vmem:[%s1871_s3 + $0x278] sm:$0xff]  ;;  %v491_v63 = vld [vmem:[%s1871_s3 + $0x248] sm:$0xff]  ;;  %v488_v0 = vld [vmem:[%s1871_s3 + $0x230] sm:$0xff] }
  0x38   :  { %1012 = vmatprep.subr.mxu0 %v113_v29  ;;  %574 = vmatpush1.msra.mxu1 %v502_v56  ;;  %v489_v62 = vld [vmem:[%s1871_s3 + $0x238] sm:$0xff]  ;;  %v490_v1 = vld [vmem:[%s1871_s3 + $0x240] sm:$0xff]  ;;  %v484_v3 = vld [vmem:[%s1871_s3 + $0x210] sm:$0xff] }
  0x39   :  { %1013 = vmatpush3.msra.mxu0 %v97_v30  ;;  %575 = vmatprep.subr.mxu1 %v496_v58  ;;  %v482_v2 = vld [vmem:[%s1871_s3 + $0x200] sm:$0xff]  ;;  %v481_v4 = vld [vmem:[%s1871_s3 + $0x1f8] sm:$0xff]  ;;  %v483_v5 = vld [vmem:[%s1871_s3 + $0x208] sm:$0xff] }
  0x3a   :  { %1014 = vmatprep.subr.mxu0 %v112_v31  ;;  %576 = vmatpush1.msra.mxu1 %v495_v60  ;;  %v475_v6 = vld [vmem:[%s1871_s3 + $0x1c8] sm:$0xff]  ;;  %v477_v7 = vld [vmem:[%s1871_s3 + $0x1d8] sm:$0xff]  ;;  %v474_v8 = vld [vmem:[%s1871_s3 + $0x1c0] sm:$0xff] }
  0x3b   :  { %1015 = vmatpush3.msra.mxu0 %v96_v32  ;;  %577 = vmatprep.subr.mxu1 %v489_v62  ;;  %v476_v9 = vld [vmem:[%s1871_s3 + $0x1d0] sm:$0xff]  ;;  %v470_v11 = vld [vmem:[%s1871_s3 + $0x1a0] sm:$0xff]  ;;  %v467_v12 = vld [vmem:[%s1871_s3 + $0x188] sm:$0xff] }
  0x3c   :  { %1016 = vmatprep.subr.mxu0 %v111_v33  ;;  %578 = vmatpush1.msra.mxu1 %v488_v0  ;;  %v468_v10 = vld [vmem:[%s1871_s3 + $0x190] sm:$0xff]  ;;  %v469_v13 = vld [vmem:[%s1871_s3 + $0x198] sm:$0xff]  ;;  %v463_v16 = vld [vmem:[%s1871_s3 + $0x168] sm:$0xff] }
  0x3d   :  { %1017 = vmatpush3.msra.mxu0 %v95_v34  ;;  %579 = vmatprep.subr.mxu1 %v482_v2  ;;  %v461_v15 = vld [vmem:[%s1871_s3 + $0x158] sm:$0xff]  ;;  %v460_v17 = vld [vmem:[%s1871_s3 + $0x150] sm:$0xff]  ;;  %v462_v18 = vld [vmem:[%s1871_s3 + $0x160] sm:$0xff] }
  0x3e   :  { %1018 = vmatprep.subr.mxu0 %v110_v35  ;;  %580 = vmatpush1.msra.mxu1 %v481_v4  ;;  %v454_v19 = vld [vmem:[%s1871_s3 + $0x120] sm:$0xff]  ;;  %v456_v20 = vld [vmem:[%s1871_s3 + $0x130] sm:$0xff]  ;;  %v453_v21 = vld [vmem:[%s1871_s3 + $0x118] sm:$0xff] }
  0x3f   :  { %1019 = vmatpush3.msra.mxu0 %v94_v36  ;;  %581 = vmatprep.subr.mxu1 %v475_v6  ;;  %v455_v22 = vld [vmem:[%s1871_s3 + $0x128] sm:$0xff]  ;;  %v449_v24 = vld [vmem:[%s1871_s3 + $0xf8] sm:$0xff]  ;;  %v446_v25 = vld [vmem:[%s1871_s3 + $0xe0] sm:$0xff] }
  0x40   :  { %1020 = vmatprep.subr.mxu0 %v109_v37  ;;  %582 = vmatpush1.msra.mxu1 %v474_v8  ;;  %v447_v23 = vld [vmem:[%s1871_s3 + $0xe8] sm:$0xff]  ;;  %v448_v26 = vld [vmem:[%s1871_s3 + $0xf0] sm:$0xff]  ;;  %v442_v28 = vld [vmem:[%s1871_s3 + $0xc0] sm:$0xff] }
  0x41   :  { %1021 = vmatpush3.msra.mxu0 %v93_v38  ;;  %583 = vmatprep.subr.mxu1 %v468_v10  ;;  %v440_v27 = vld [vmem:[%s1871_s3 + $0xb0] sm:$0xff]  ;;  %v439_v29 = vld [vmem:[%s1871_s3 + $0xa8] sm:$0xff]  ;;  %v441_v30 = vld [vmem:[%s1871_s3 + $0xb8] sm:$0xff] }
  0x42   :  { %1022 = vmatprep.subr.mxu0 %v108_v39  ;;  %584 = vmatpush1.msra.mxu1 %v467_v12  ;;  %v433_v31 = vld [vmem:[%s1871_s3 + $0x78] sm:$0xff]  ;;  %v435_v32 = vld [vmem:[%s1871_s3 + $0x88] sm:$0xff]  ;;  %v432_v33 = vld [vmem:[%s1871_s3 + $0x70] sm:$0xff] }
  0x43   :  { %1023 = vmatpush3.msra.mxu0 %v92_v40  ;;  %585 = vmatprep.subr.mxu1 %v461_v15  ;;  %v434_v34 = vld [vmem:[%s1871_s3 + $0x80] sm:$0xff]  ;;  %v428_v36 = vld [vmem:[%s1871_s3 + $0x50] sm:$0xff]  ;;  %v425_v37 = vld [vmem:[%s1871_s3 + $0x38] sm:$0xff] }
  0x44   :  { %342 = vmatmul.mubr.f32.vlgmr.msra.gmra.mxu0 %v25_v41  ;;  %638 = vmatprep.subr.mxu0 %v526_v43  ;;  %v426_v35 = vld [vmem:[%s1871_s3 + $0x40] sm:$0xff]  ;;  %v427_v38 = vld [vmem:[%s1871_s3 + $0x48] sm:$0xff]  ;;  %v421_v40 = vld [vmem:[%s1871_s3 + $0x18] sm:$0xff] }
  0x45   :  { %702 = vmatprep.mubr.f32.mxu0 %v1142_v14  ;;  %639 = vmatpush1.msra.mxu0 %v525_v45  ;;  %v419_v39 = vld [vmem:[%s1871_s3 + $0x8] sm:$0xff]  ;;  %v418_v41 = vld [vmem:[%s1871_s3] sm:$0xff]  ;;  %v420_v42 = vld [vmem:[%s1871_s3 + $0x10] sm:$0xff] }
  0x46   :  { %640 = vmatprep.subr.mxu0 %v519_v47  ;;  %586 = vmatpush1.msra.mxu1 %v460_v17  ;;  %v528_v43 = vld [vmem:[%s1871_s3 + $0x370] sm:$0xff]  ;;  %v529_v62 = vld [vmem:[%s1871_s3 + $0x378] sm:$0xff]  ;;  %v514_v2 = vld [vmem:[%s1871_s3 + $0x300] sm:$0xff] }
  0x47   :  { %641 = vmatpush1.msra.mxu0 %v518_v49  ;;  %587 = vmatprep.subr.mxu1 %v454_v19  ;;  %v520_v0 = vld [vmem:[%s1871_s3 + $0x330] sm:$0xff]  ;;  %v515_v4 = vld [vmem:[%s1871_s3 + $0x308] sm:$0xff]  ;;  %v506_v6 = vld [vmem:[%s1871_s3 + $0x2c0] sm:$0xff] }
  0x48   :  { %642 = vmatprep.subr.mxu0 %v512_v51  ;;  %588 = vmatpush1.msra.mxu1 %v453_v21  ;;  %v913_v51 = vld [vmem:[%s1870_s2] ss:$0 sm:$0xff]  ;;  %v500_v8 = vld [vmem:[%s1871_s3 + $0x290] sm:$0xff]  ;;  %v501_v10 = vld [vmem:[%s1871_s3 + $0x298] sm:$0xff] }
  0x49   :  { %643 = vmatpush1.msra.mxu0 %v511_v53  ;;  %589 = vmatprep.subr.mxu1 %v447_v23  ;;  %v492_v12 = vld [vmem:[%s1871_s3 + $0x250] sm:$0xff]  ;;  %v486_v15 = vld [vmem:[%s1871_s3 + $0x220] sm:$0xff]  ;;  %v487_v17 = vld [vmem:[%s1871_s3 + $0x228] sm:$0xff] }
  0x4a   :  { %644 = vmatprep.subr.mxu0 %v505_v55  ;;  %590 = vmatpush1.msra.mxu1 %v446_v25  ;;  %v478_v19 = vld [vmem:[%s1871_s3 + $0x1e0] sm:$0xff]  ;;  %v472_v21 = vld [vmem:[%s1871_s3 + $0x1b0] sm:$0xff]  ;;  %v473_v23 = vld [vmem:[%s1871_s3 + $0x1b8] sm:$0xff] }
  0x4b   :  { %645 = vmatpush1.msra.mxu0 %v504_v57  ;;  %591 = vmatprep.subr.mxu1 %v440_v27  ;;  %v464_v25 = vld [vmem:[%s1871_s3 + $0x170] sm:$0xff]  ;;  %v458_v27 = vld [vmem:[%s1871_s3 + $0x140] sm:$0xff] }
  0x4c   :  { %646 = vmatprep.subr.mxu0 %v498_v59  ;;  %592 = vmatpush1.msra.mxu1 %v439_v29  ;;  %v459_v29 = vld [vmem:[%s1871_s3 + $0x148] sm:$0xff] }
  0x4d   :  { %647 = vmatpush1.msra.mxu0 %v497_v61  ;;  %593 = vmatprep.subr.mxu1 %v433_v31  ;;  %v527_v61 = vld [vmem:[%s1871_s3 + $0x368] sm:$0xff]  ;;  %v450_v31 = vld [vmem:[%s1871_s3 + $0x100] sm:$0xff] }
  0x4e   :  { %648 = vmatprep.subr.mxu0 %v491_v63  ;;  %594 = vmatpush1.msra.mxu1 %v432_v33  ;;  %v521_v63 = vld [vmem:[%s1871_s3 + $0x338] sm:$0xff]  ;;  %v444_v33 = vld [vmem:[%s1871_s3 + $0xd0] sm:$0xff] }
  0x4f   :  { %649 = vmatpush1.msra.mxu0 %v490_v1  ;;  %595 = vmatprep.subr.mxu1 %v426_v35  ;;  %v522_v1 = vld [vmem:[%s1871_s3 + $0x340] sm:$0xff]  ;;  %v445_v35 = vld [vmem:[%s1871_s3 + $0xd8] sm:$0xff] }
  0x50   :  { %650 = vmatprep.subr.mxu0 %v484_v3  ;;  %596 = vmatpush1.msra.mxu1 %v425_v37  ;;  %v513_v3 = vld [vmem:[%s1871_s3 + $0x2f8] sm:$0xff]  ;;  %v436_v37 = vld [vmem:[%s1871_s3 + $0x90] sm:$0xff] }
  0x51   :  { %651 = vmatpush1.msra.mxu0 %v483_v5  ;;  %597 = vmatprep.subr.mxu1 %v419_v39  ;;  %v507_v5 = vld [vmem:[%s1871_s3 + $0x2c8] sm:$0xff]  ;;  %v430_v39 = vld [vmem:[%s1871_s3 + $0x60] sm:$0xff] }
  0x52   :  { %652 = vmatprep.subr.mxu0 %v477_v7  ;;  %598 = vmatpush1.msra.mxu1 %v418_v41  ;;  %v508_v7 = vld [vmem:[%s1871_s3 + $0x2d0] sm:$0xff]  ;;  %v431_v41 = vld [vmem:[%s1871_s3 + $0x68] sm:$0xff] }
  0x53   :  { %653 = vmatpush1.msra.mxu0 %v476_v9  ;;  %709 = vmatprep.subr.mxu1 %v528_v43  ;;  %v499_v9 = vld [vmem:[%s1871_s3 + $0x288] sm:$0xff]  ;;  %v422_v43 = vld [vmem:[%s1871_s3 + $0x20] sm:$0xff] }
  0x54   :  { %654 = vmatprep.subr.mxu0 %v470_v11  ;;  %v493_v11 = vld [vmem:[%s1871_s3 + $0x258] sm:$0xff] }
  0x55   :  { %655 = vmatpush1.msra.mxu0 %v469_v13  ;;  %v494_v13 = vld [vmem:[%s1871_s3 + $0x260] sm:$0xff] }
  0x56   :  { %656 = vmatprep.subr.mxu0 %v463_v16  ;;  %v485_v16 = vld [vmem:[%s1871_s3 + $0x218] sm:$0xff] }
  0x57   :  { %657 = vmatpush1.msra.mxu0 %v462_v18  ;;  %v479_v18 = vld [vmem:[%s1871_s3 + $0x1e8] sm:$0xff] }
  0x58   :  { %658 = vmatprep.subr.mxu0 %v456_v20  ;;  %v480_v20 = vld [vmem:[%s1871_s3 + $0x1f0] sm:$0xff] }
  0x59   :  { %659 = vmatpush1.msra.mxu0 %v455_v22  ;;  %v471_v22 = vld [vmem:[%s1871_s3 + $0x1a8] sm:$0xff] }
  0x5a   :  { %660 = vmatprep.subr.mxu0 %v449_v24  ;;  %v465_v24 = vld [vmem:[%s1871_s3 + $0x178] sm:$0xff] }
  0x5b   :  { %661 = vmatpush1.msra.mxu0 %v448_v26  ;;  %v466_v26 = vld [vmem:[%s1871_s3 + $0x180] sm:$0xff] }
  0x5c   :  { %662 = vmatprep.subr.mxu0 %v442_v28  ;;  %v457_v28 = vld [vmem:[%s1871_s3 + $0x138] sm:$0xff] }
  0x5d   :  { %663 = vmatpush1.msra.mxu0 %v441_v30  ;;  %v451_v30 = vld [vmem:[%s1871_s3 + $0x108] sm:$0xff] }
  0x5e   :  { %664 = vmatprep.subr.mxu0 %v435_v32  ;;  %v452_v32 = vld [vmem:[%s1871_s3 + $0x110] sm:$0xff] }
  0x5f   :  { %665 = vmatpush1.msra.mxu0 %v434_v34  ;;  %v443_v34 = vld [vmem:[%s1871_s3 + $0xc8] sm:$0xff] }
  0x60   :  { %666 = vmatprep.subr.mxu0 %v428_v36  ;;  %v437_v36 = vld [vmem:[%s1871_s3 + $0x98] sm:$0xff] }
  0x61   :  { %667 = vmatpush1.msra.mxu0 %v427_v38  ;;  %v438_v38 = vld [vmem:[%s1871_s3 + $0xa0] sm:$0xff] }
  0x62   :  { %668 = vmatprep.subr.mxu0 %v421_v40  ;;  %v429_v40 = vld [vmem:[%s1871_s3 + $0x58] sm:$0xff] }
  0x63   :  { %669 = vmatpush1.msra.mxu0 %v420_v42  ;;  %v423_v42 = vld [vmem:[%s1871_s3 + $0x28] sm:$0xff] }
  0x64   :  { %1054 = vmatprep.subr.mxu0 %v1142_v14 }
  0xe2   :  { %v954_v48 = vpop.f32.mrf.mxu0 }
  0xe4   :  { %v955_v49 = vpop.f32.mrf.mxu0 }
  0xe5   :  { %v956_v50 = vadd.f32 %v955_v49, %v954_v48  ;;  %v530_v49 = vld [vmem:[%s1872_s4] sm:$0x7f]  ;;  %s1144_s4 = smov [#allocation2]  }
  0xe6   :  { %v989_v44 = vpop.f32.mrf.mxu1  ;;  %s905_s8 = sshll.u32 %s1144_s4, 4  ;;  %s906_s8 = int_to_ptr.vmem [resolvable:$true] %s905_s8 }
  0xe7   :  { %v204_v52 = vadd.f32 %v956_v50, %v913_v51  ;;  %s1120_s9 = scalar_lea.vmem %s906_s8, 896  ;;  %p1125_p1 = scmp.lt.s32.totalorder %s906_s8, %s906_s8 }
  0xe8   :  { %v990_v45 = vpop.f32.mrf.mxu1  ;;  %p1121_p0 = scmp.ne.s32.totalorder %s906_s8, %s1120_s9  ;;  %p1126_p2 = scmp.lt.s32.totalorder %s1120_s9, %s1120_s9 }
  0xe9   :  { %v991_v53 = vadd.f32 %v990_v45, %v989_v44  ;;  %v424_v44 = vld [vmem:[%s1871_s3 + $0x30] sm:$0xff]  ;;  %v532_v45 = vlaneseq }
  0xea   :  { %p1127_p3 = por %p1126_p2, %p1125_p1 }
  0xeb   :  { %v274_v56 = vadd.f32 %v991_v53, %v204_v52 }
  0xec   :  { %p1128_p4 = pnand %p1127_p3, %p1121_p0 }
  0xed   :  { %v413_v46 = vpop.f32.mrf.mxu1 }
  0xef   :  { %v1053_v47 = vpop.f32.mrf.mxu1 }
 0x104   :  { %v1024_v54 = vpop.f32.mrf.mxu0 }
 0x106   :  { %v1025_v55 = vpop.f32.mrf.mxu0 }
 0x107   :  { %v1026_v57 = vadd.f32 %v1025_v55, %v1024_v54 }
 0x109   :  { %v344_v58 = vadd.f32 %v1026_v57, %v274_v56 }
 0x10b   :  { %v414_v59 = vadd.f32 %v413_v46, %v344_v58  ;;  %v533_v46 = vshrl.u32 %v532_v45, 7 }
 0x10d   :  { %v1696_v60 = vmax.f32 %v414_v59, 0.0  ;;  %v534_v47 = vsub.s32 0, %v533_v46  ;;  %v542_v48 = vsub.s32 2, %v533_v46  ;;  %v538_v50 = vsub.s32 1, %v533_v46 }
 0x10e   :  { %v546_v51 = vsub.s32 3, %v533_v46 }
 0x10f   :  { %632 = vmatmul.mubr.f32.vlgmr.msra.gmra.mxu1 %v1696_v60  ;;  %703 = vmatmul.mubr.f32.vlgmr.msra.gmra.mxu0 %v1696_v60  ;;  %v535_v52 = vrot.slane %v530_v49, %v534_v47  ;;  %v543_v53 = vrot.slane %v530_v49, %v542_v48  ;;  %v539_v54 = vrot.slane %v530_v49, %v538_v50 }
 0x110   :  { %710 = vmatpush1.msra.mxu1 %v527_v61  ;;  %1055 = vmatpush3.msra.mxu0 %v529_v62  ;;  %v547_v55 = vrot.slane %v530_v49, %v546_v51 }
 0x111   :  { %711 = vmatprep.subr.mxu1 %v521_v63  ;;  %1056 = vmatprep.subr.mxu0 %v1142_v14 }
 0x112   :  { %712 = vmatpush1.msra.mxu1 %v520_v0  ;;  %1057 = vmatpush3.msra.mxu0 %v522_v1 }
 0x113   :  { %713 = vmatprep.subr.mxu1 %v514_v2  ;;  %1058 = vmatprep.subr.mxu0 %v1142_v14 }
 0x114   :  { %714 = vmatpush1.msra.mxu1 %v513_v3  ;;  %1059 = vmatpush3.msra.mxu0 %v515_v4 }
 0x115   :  { %715 = vmatprep.subr.mxu1 %v507_v5  ;;  %1060 = vmatprep.subr.mxu0 %v1142_v14 }
 0x116   :  { %716 = vmatpush1.msra.mxu1 %v506_v6  ;;  %1061 = vmatpush3.msra.mxu0 %v508_v7 }
 0x117   :  { %717 = vmatprep.subr.mxu1 %v500_v8  ;;  %1062 = vmatprep.subr.mxu0 %v1142_v14 }
 0x118   :  { %718 = vmatpush1.msra.mxu1 %v499_v9  ;;  %1063 = vmatpush3.msra.mxu0 %v501_v10 }
 0x119   :  { %719 = vmatprep.subr.mxu1 %v493_v11  ;;  %1064 = vmatprep.subr.mxu0 %v1142_v14  ;;  %v550_v11 = vsub.s32 4, %v533_v46 }
 0x11a   :  { %720 = vmatpush1.msra.mxu1 %v492_v12  ;;  %1065 = vmatpush3.msra.mxu0 %v494_v13  ;;  %v558_v12 = vsub.s32 6, %v533_v46  ;;  %v554_v13 = vsub.s32 5, %v533_v46 }
 0x11b   :  { %721 = vmatprep.subr.mxu1 %v486_v15  ;;  %1066 = vmatprep.subr.mxu0 %v1142_v14  ;;  %v551_v15 = vrot.slane %v530_v49, %v550_v11 }
 0x11c   :  { %722 = vmatpush1.msra.mxu1 %v485_v16  ;;  %1067 = vmatpush3.msra.mxu0 %v487_v17  ;;  %v559_v16 = vrot.slane %v530_v49, %v558_v12  ;;  %v555_v17 = vrot.slane %v530_v49, %v554_v13 }
 0x11d   :  { %723 = vmatprep.subr.mxu1 %v479_v18  ;;  %1068 = vmatprep.subr.mxu0 %v1142_v14 }
 0x11e   :  { %724 = vmatpush1.msra.mxu1 %v478_v19  ;;  %1069 = vmatpush3.msra.mxu0 %v480_v20 }
 0x11f   :  { %725 = vmatprep.subr.mxu1 %v472_v21  ;;  %1070 = vmatprep.subr.mxu0 %v1142_v14 }
 0x120   :  { %726 = vmatpush1.msra.mxu1 %v471_v22  ;;  %1071 = vmatpush3.msra.mxu0 %v473_v23 }
 0x121   :  { %727 = vmatprep.subr.mxu1 %v465_v24  ;;  %1072 = vmatprep.subr.mxu0 %v1142_v14 }
 0x122   :  { %728 = vmatpush1.msra.mxu1 %v464_v25  ;;  %1073 = vmatpush3.msra.mxu0 %v466_v26 }
 0x123   :  { %729 = vmatprep.subr.mxu1 %v458_v27  ;;  %1074 = vmatprep.subr.mxu0 %v1142_v14 }
 0x124   :  { %730 = vmatpush1.msra.mxu1 %v457_v28  ;;  %1075 = vmatpush3.msra.mxu0 %v459_v29 }
 0x125   :  { %731 = vmatprep.subr.mxu1 %v451_v30  ;;  %1076 = vmatprep.subr.mxu0 %v1142_v14 }
 0x126   :  { %732 = vmatpush1.msra.mxu1 %v450_v31  ;;  %1077 = vmatpush3.msra.mxu0 %v452_v32 }
 0x127   :  { %733 = vmatprep.subr.mxu1 %v444_v33  ;;  %1078 = vmatprep.subr.mxu0 %v1142_v14 }
 0x128   :  { %734 = vmatpush1.msra.mxu1 %v443_v34  ;;  %1079 = vmatpush3.msra.mxu0 %v445_v35 }
 0x129   :  { %735 = vmatprep.subr.mxu1 %v437_v36  ;;  %1080 = vmatprep.subr.mxu0 %v1142_v14 }
 0x12a   :  { %736 = vmatpush1.msra.mxu1 %v436_v37  ;;  %1081 = vmatpush3.msra.mxu0 %v438_v38 }
 0x12b   :  { %737 = vmatprep.subr.mxu1 %v430_v39  ;;  %1082 = vmatprep.subr.mxu0 %v1142_v14 }
 0x12c   :  { %738 = vmatpush1.msra.mxu1 %v429_v40  ;;  %1083 = vmatpush3.msra.mxu0 %v431_v41 }
 0x12d   :  { %739 = vmatprep.subr.mxu1 %v423_v42  ;;  %1084 = vmatprep.subr.mxu0 %v1142_v14 }
 0x12e   :  { %740 = vmatpush1.msra.mxu1 %v422_v43  ;;  %773 = vmatprep.mubr.f32.mxu1 %v1142_v14 }
 0x12f   :  { %1085 = vmatpush3.msra.mxu0 %v424_v44  ;;  %1086 = vmatprep.mubr.msk.f32.mxu0 %vm1143_vm1, %v1142_v14 }
 0x130   :  { %774 = vmatmul.mubr.f32.vlgmr.msra.gmra.mxu1 %v1696_v60  ;;  %1087 = vmatmul.mubr.f32.vlgmr.msra.gmra.mxu0 %v1696_v60 }
 0x1cf   :  { %v633_v56 = vpop.f32.mrf.mxu1  ;;  %v704_v14 = vpop.f32.mrf.mxu0 }
 0x1d0   :  { %v634_v57 = vadd.f32 %v633_v56, %v535_v52  ;;  %v705_v58 = vadd.f32 %v704_v14, %v543_v53 }
 0x1d1   :  { %v635_v59 = vpop.f32.mrf.mxu1  ;;  %v706_v60 = vpop.f32.mrf.mxu0 }
 0x1d2   :  { %v915_v61 = vmul.f32 -1.442695, %v634_v57  ;;  %v917_v62 = vmul.f32 -1.442695, %v705_v58  ;;  %v636_v63 = vadd.f32 %v635_v59, %v539_v54  ;;  %v707_v0 = vadd.f32 %v706_v60, %v547_v55 }
 0x1d4   :  { %1092 = vpow2.f32 %v915_v61  ;;  %v916_v1 = vmul.f32 -1.442695, %v636_v63  ;;  %v918_v2 = vmul.f32 -1.442695, %v707_v0 }
 0x1d5   :  { %1094 = vpow2.f32 %v917_v62 }
 0x1d6   :  { %1096 = vpow2.f32 %v916_v1 }
 0x1d7   :  { %1098 = vpow2.f32 %v918_v2 }
 0x1e1   :  { %v1093_v3 = vpop.eup %1092 }
 0x1e2   :  { %v1095_v4 = vpop.eup %1094  ;;  %v871_v5 = vadd.f32 1.0, %v1093_v3 }
 0x1e3   :  { %v1097_v6 = vpop.eup %1096  ;;  %v873_v7 = vadd.f32 1.0, %v1095_v4 }
 0x1e4   :  { %v1099_v8 = vpop.eup %1098  ;;  %1100 = vrcp.f32 %v871_v5  ;;  %v872_v9 = vadd.f32 1.0, %v1097_v6 }
 0x1e5   :  { %1102 = vrcp.f32 %v873_v7  ;;  %v874_v10 = vadd.f32 1.0, %v1099_v8 }
 0x1e6   :  { %1104 = vrcp.f32 %v872_v9 }
 0x1e7   :  { %1106 = vrcp.f32 %v874_v10 }
 0x1f0   :  { %v775_v18 = vpop.f32.mrf.mxu1  ;;  %v846_v19 = vpop.f32.mrf.mxu0 }
 0x1f1   :  { %v1101_v20 = vpop.eup %1100  ;;  %v776_v21 = vadd.f32 %v775_v18, %v551_v15  ;;  %v847_v22 = vadd.f32 %v846_v19, %v559_v16 }
 0x1f2   :  { %v1103_v23 = vpop.eup %1102  ;;  %892 = vst [vmem:[#allocation2] sm:$0xff] %v1101_v20  ;;  %v777_v24 = vpop.f32.mrf.mxu1 }
 0x1f3   :  { %v1088_v25 = vpop.f32.mrf.mxu0  ;;  %v1105_v26 = vpop.eup %1104  ;;  %894 = vst [vmem:[#allocation2 + $0x10] sm:$0xff] %v1103_v23  ;;  %v919_v27 = vmul.f32 -1.442695, %v776_v21  ;;  %v921_v28 = vmul.f32 -1.442695, %v847_v22  ;;  %v778_v29 = vadd.f32 %v777_v24, %v555_v17 }
 0x1f4   :  { %v1107_v30 = vpop.eup %1106  ;;  %893 = vst [vmem:[#allocation2 + $0x8] sm:$0xff] %v1105_v26 }
 0x1f5   :  { %895 = vst [vmem:[#allocation2 + $0x18] sm:$0xff] %v1107_v30  ;;  %1108 = vpow2.f32 %v919_v27  ;;  %v920_v31 = vmul.f32 -1.442695, %v778_v29 }
 0x1f6   :  { %1110 = vpow2.f32 %v921_v28 }
 0x1f7   :  { %1112 = vpow2.f32 %v920_v31 }
 0x202   :  { %v1109_v32 = vpop.eup %1108 }
 0x203   :  { %v1111_v33 = vpop.eup %1110  ;;  %v875_v34 = vadd.f32 1.0, %v1109_v32 }
 0x204   :  { %v1113_v35 = vpop.eup %1112  ;;  %v877_v36 = vadd.f32 1.0, %v1111_v33 }
 0x205   :  { %1114 = vrcp.f32 %v875_v34  ;;  %v876_v37 = vadd.f32 1.0, %v1113_v35 }
 0x206   :  { %1116 = vrcp.f32 %v877_v36 }
 0x207   :  { %1118 = vrcp.f32 %v876_v37 }
 0x212   :  { %v1115_v38 = vpop.eup %1114 }
 0x213   :  { %v1117_v39 = vpop.eup %1116  ;;  %896 = vst [vmem:[#allocation2 + $0x20] sm:$0xff] %v1115_v38 }
 0x214   :  { %v1119_v40 = vpop.eup %1118  ;;  %898 = vst.msk [vmem:[#allocation2 + $0x30] sm:$0xff] %vm133_vm0, %v1117_v39 }
 0x215   :  { %897 = vst [vmem:[#allocation2 + $0x28] sm:$0xff] %v1119_v40 }
 0x216   :  { %1131 = shalt.err (!%p1128_p4)
}
 0x217   :  { %908 = dma.vmem_to_hbm [thread:$0]  %s906_s8, 896, %s1873_s5, [#allocation3]  }
 0x218   :  { %1140 = dma.done.wait [#allocation3], 896  }
 0x219   :  { %1141 = vsyncadd [#allocation3], 4294966400 }
 0x21a   :  { %912 = vsyncpa [#allocation3], 1 }

</bundles_post_ra>
